<compile_context>
chip_gen: v6e
topology: v6e:2x2x1
jax: 0.10.0
libtpu: 0.0.40
codegen_flags: <defaults>
</compile_context>

<pallas_src>
import functools

import jax
import jax.numpy as jnp
from jax.experimental import pallas as pl
from jax.experimental.pallas import tpu as pltpu


# Keep per-step VMEM well under v7x's 64 MiB physical budget (also fine on v5e/v6e).
_VMEM_LIMIT_BYTES = 48 * 1024 * 1024


def _tile(dim, target, align):
    """Largest tile <= target that divides `dim` and is a multiple of `align`.

    Falls back to the full dimension (always legal for Pallas block shapes).
    """
    if dim <= target:
        return dim
    t = (target // align) * align
    while t >= align:
        if dim % t == 0:
            return t
        t -= align
    return dim


# ----------------------------- Tiled linear kernel ----------------------------

def _linear_kernel(x_ref, w_ref, b_ref, o_ref, acc_ref):
    # x: [tm, tk], w: [tk, tn], b: [1, tn], acc/o: [tm, tn]
    @pl.when(pl.program_id(2) == 0)
    def _():
        acc_ref[...] = jnp.zeros_like(acc_ref)

    acc_ref[...] += jnp.dot(
        x_ref[...], w_ref[...], preferred_element_type=jnp.float32
    )

    @pl.when(pl.program_id(2) == pl.num_programs(2) - 1)
    def _():
        o_ref[...] = (acc_ref[...] + b_ref[...].astype(jnp.float32)).astype(o_ref.dtype)


def linear(x, w, b, *, matmul_dtype=None, out_dtype=jnp.float32,
           tm_target=256, tn_target=256, tk_target=256):
    """x: [M, K]; w: [K, N]; b: [N] -> [M, N] (f32 accumulation)."""
    M, K = x.shape
    K2, N = w.shape
    assert K == K2
    if matmul_dtype is not None:
        x = x.astype(matmul_dtype)
        w = w.astype(matmul_dtype)

    # Note: on v5e prefer tk_target=128 (4x128^2 MXU); 256 suits v6e/v7x.
    tm = _tile(M, tm_target, 8)
    tn = _tile(N, tn_target, 128)
    tk = _tile(K, tk_target, 128)
    grid = (M // tm, N // tn, K // tk)

    return pl.pallas_call(
        _linear_kernel,
        out_shape=jax.ShapeDtypeStruct((M, N), out_dtype),
        grid_spec=pltpu.PrefetchScalarGridSpec(
            num_scalar_prefetch=0,
            grid=grid,
            in_specs=[
                pl.BlockSpec((tm, tk), lambda i, j, k: (i, k)),
                pl.BlockSpec((tk, tn), lambda i, j, k: (k, j)),
                pl.BlockSpec((1, tn), lambda i, j, k: (0, j)),
            ],
            out_specs=pl.BlockSpec((tm, tn), lambda i, j, k: (i, j)),
            scratch_shapes=[pltpu.VMEM((tm, tn), jnp.float32)],
        ),
        compiler_params=pltpu.CompilerParams(
            dimension_semantics=("parallel", "parallel", "arbitrary"),
            vmem_limit_bytes=_VMEM_LIMIT_BYTES,
        ),
    )(x, w, b.reshape(1, N).astype(jnp.float32))


# ----------------------------- Attention kernels -------------------------------

def _attention_body(q, k, v, bias, o_ref, a_ref, n_heads, inv_scale):
    """q: [tq, H]; k, v: [Sk, H]; bias: [tq, Sk] f32 or None."""
    H = q.shape[-1]
    D = H // n_heads

    # Fold 1/scale into q once (cheap [tq, H] multiply instead of [tq, Sk] divide).
    qs = q * inv_scale

    ctx_parts = []
    for h in range(n_heads):  # n_heads is small & static -> unrolled
        lo = h * D
        qh = qs[:, lo:lo + D]
        kh = k[:, lo:lo + D]
        vh = v[:, lo:lo + D]

        # q @ k^T as a contraction over the last dims (no explicit transpose).
        energy = jax.lax.dot_general(
            qh, kh,
            dimension_numbers=(((1,), (1,)), ((), ())),
            preferred_element_type=jnp.float32,
        )  # [tq, Sk] f32
        if bias is not None:
            energy = energy + bias  # additive -1e10 mask bias (no compare+select)

        # Numerically stable softmax; division replaced by EUP approx reciprocal.
        e_max = jnp.max(energy, axis=-1, keepdims=True)
        p = jnp.exp(energy - e_max)
        denom = jnp.sum(p, axis=-1, keepdims=True)
        attn = p * pl.reciprocal(denom, approx=True)

        a_ref[0, h] = attn.astype(a_ref.dtype)
        ctx_parts.append(
            jnp.dot(attn.astype(vh.dtype), vh, preferred_element_type=jnp.float32)
        )

    # Heads folded back into the lane dim -> single lane-dense [tq, H] store.
    o_ref[0] = jnp.concatenate(ctx_parts, axis=-1).astype(o_ref.dtype)


def _attn_kernel_nomask(q_ref, k_ref, v_ref, o_ref, a_ref, *, n_heads, inv_scale):
    _attention_body(q_ref[0], k_ref[0], v_ref[0], None, o_ref, a_ref,
                    n_heads, inv_scale)


def _attn_kernel_mask(q_ref, k_ref, v_ref, bias_ref, o_ref, a_ref, *, n_heads,
                      inv_scale):
    _attention_body(q_ref[0], k_ref[0], v_ref[0], bias_ref[0].astype(jnp.float32),
                    o_ref, a_ref, n_heads, inv_scale)


def mha_attention(q, k, v, bias, n_heads, *, matmul_dtype=None, tq_target=256):
    """q: [B, Sq, H]; k, v: [B, Sk, H]; bias: [B, Sq, Sk] f32 or None.

    Returns (context [B, Sq, H], attention [B, n_heads, Sq, Sk]).
    """
    B, Sq, H = q.shape
    Sk = k.shape[1]
    D = H // n_heads
    inv_scale = 1.0 / (float(D) ** 0.5)

    if matmul_dtype is not None:
        q = q.astype(matmul_dtype)
        k = k.astype(matmul_dtype)
        v = v.astype(matmul_dtype)

    tq = _tile(Sq, tq_target, 8)
    grid = (B, Sq // tq)

    if bias is None:
        kernel = functools.partial(_attn_kernel_nomask, n_heads=n_heads,
                                   inv_scale=inv_scale)
        in_specs = [
            pl.BlockSpec((1, tq, H), lambda b, qi: (b, qi, 0)),
            pl.BlockSpec((1, Sk, H), lambda b, qi: (b, 0, 0)),
            pl.BlockSpec((1, Sk, H), lambda b, qi: (b, 0, 0)),
        ]
        args = (q, k, v)
    else:
        kernel = functools.partial(_attn_kernel_mask, n_heads=n_heads,
                                   inv_scale=inv_scale)
        in_specs = [
            pl.BlockSpec((1, tq, H), lambda b, qi: (b, qi, 0)),
            pl.BlockSpec((1, Sk, H), lambda b, qi: (b, 0, 0)),
            pl.BlockSpec((1, Sk, H), lambda b, qi: (b, 0, 0)),
            pl.BlockSpec((1, tq, Sk), lambda b, qi: (b, qi, 0)),
        ]
        args = (q, k, v, bias)

    x, attn = pl.pallas_call(
        kernel,
        out_shape=(
            jax.ShapeDtypeStruct((B, Sq, H), jnp.float32),
            jax.ShapeDtypeStruct((B, n_heads, Sq, Sk), jnp.float32),
        ),
        grid=grid,
        in_specs=in_specs,
        out_specs=(
            pl.BlockSpec((1, tq, H), lambda b, qi: (b, qi, 0)),
            pl.BlockSpec((1, n_heads, tq, Sk), lambda b, qi: (b, 0, qi, 0)),
        ),
        compiler_params=pltpu.CompilerParams(
            dimension_semantics=("parallel", "parallel"),
            vmem_limit_bytes=_VMEM_LIMIT_BYTES,
        ),
    )(*args)
    return x, attn


# ------------------------------ Module forward ---------------------------------

def init_params(key, hidden_dim):
    ks = jax.random.split(key, 8)
    scale = 0.1

    def w(k):  # stored as [in, out] (PyTorch keeps [out, in]; pre-transposed)
        return (scale * jax.random.normal(k, (hidden_dim, hidden_dim))).astype(jnp.float32)

    def b(k):
        return (scale * jax.random.normal(k, (hidden_dim,))).astype(jnp.float32)

    return {
        "wq": w(ks[0]), "bq": b(ks[1]),
        "wk": w(ks[2]), "bk": b(ks[3]),
        "wv": w(ks[4]), "bv": b(ks[5]),
        "wo": w(ks[6]), "bo": b(ks[7]),
    }


def multi_head_attention_forward(params, query, key, value, n_heads, mask=None,
                                 matmul_dtype=None):
    """matmul_dtype: set to jnp.bfloat16 on v6e/v7x for MXU-rate matmuls; None keeps
    full f32 (PyTorch-exact) semantics and suits v5e."""
    B, Sq, H = query.shape
    Sk = key.shape[1]

    # fc_q / fc_k / fc_v: fuse into one [H, 3H] projection for self-attention
    # (reads the activations from HBM once, 3x wider MXU N, one pallas_call).
    if (query is key) and (key is value):
        w_qkv = jnp.concatenate([params["wq"], params["wk"], params["wv"]], axis=1)
        b_qkv = jnp.concatenate([params["bq"], params["bk"], params["bv"]])
        qkv = linear(query.reshape(B * Sq, H), w_qkv, b_qkv, matmul_dtype=matmul_dtype)
        q2d, k2d, v2d = jnp.split(qkv, 3, axis=1)
        q = q2d.reshape(B, Sq, H)
        k = k2d.reshape(B, Sk, H)
        v = v2d.reshape(B, Sk, H)
    else:
        q = linear(query.reshape(B * Sq, H), params["wq"], params["bq"],
                   matmul_dtype=matmul_dtype).reshape(B, Sq, H)
        k = linear(key.reshape(B * Sk, H), params["wk"], params["bk"],
                   matmul_dtype=matmul_dtype).reshape(B, Sk, H)
        v = linear(value.reshape(B * Sk, H), params["wv"], params["bv"],
                   matmul_dtype=matmul_dtype).reshape(B, Sk, H)

    # Mask -> additive bias precomputed once (mask == 0 -> -1e10), f32, [B, Sq, Sk].
    if mask is None:
        bias = None
    else:
        m = jnp.broadcast_to(mask, (B, 1, Sq, Sk))[:, 0]
        bias = jnp.where(m == 0, jnp.float32(-1e10), jnp.float32(0.0))

    # Attention stays in [B, S, H] layout; head split happens inside the kernel,
    # so no XLA split/merge-head transposes are needed.
    x, attention = mha_attention(q, k, v, bias, n_heads, matmul_dtype=matmul_dtype)

    # fc_o
    outputs = linear(x.reshape(B * Sq, H), params["wo"], params["bo"],
                     matmul_dtype=matmul_dtype).reshape(B, Sq, H)
    return outputs, attention


# --------------------------- Pure-JAX reference ---------------------------------

def ref_forward(params, query, key, value, n_heads, mask=None):
    B, Sq, H = query.shape
    D = H // n_heads
    scale = float(D) ** 0.5

    q = query @ params["wq"] + params["bq"]
    k = key @ params["wk"] + params["bk"]
    v = value @ params["wv"] + params["bv"]

    def split(t):
        return t.reshape(B, -1, n_heads, D).transpose(0, 2, 1, 3)

    q, k, v = split(q), split(k), split(v)
    energy = jnp.einsum("bhqd,bhkd->bhqk", q, k) / scale
    if mask is not None:
        energy = jnp.where(mask == 0, jnp.float32(-1e10), energy)
    attn = jax.nn.softmax(energy, axis=-1)
    x = jnp.einsum("bhqk,bhkd->bhqd", attn, v)
    x = x.transpose(0, 2, 1, 3).reshape(B, Sq, H)
    out = x @ params["wo"] + params["bo"]
    return out, attn


# ------------------------------------ Main --------------------------------------

if __name__ == "__main__":
    hidden_dim = 32
    n_heads = 4
    batch = 2
    seq = 8

    root = jax.random.PRNGKey(0)
    kp, kx, kq, kk, kv = jax.random.split(root, 5)
    params = init_params(kp, hidden_dim)

    # Case 1: self-attention (exercises fused QKV projection) with a causal mask.
    x_in = jax.random.normal(kx, (batch, seq, hidden_dim), jnp.float32)
    causal_mask = jnp.tril(jnp.ones((seq, seq), jnp.int32))[None, None]  # [1,1,S,S]
    out1, attn1 = multi_head_attention_forward(
        params, x_in, x_in, x_in, n_heads, mask=causal_mask)
    ref_out1, ref_attn1 = ref_forward(params, x_in, x_in, x_in, n_heads,
                                      mask=causal_mask)

    # Case 2: cross-attention (separate Q/K/V projections), no mask.
    q_in = jax.random.normal(kq, (batch, seq, hidden_dim), jnp.float32)
    k_in = jax.random.normal(kk, (batch, seq, hidden_dim), jnp.float32)
    v_in = jax.random.normal(kv, (batch, seq, hidden_dim), jnp.float32)
    out2, attn2 = multi_head_attention_forward(
        params, q_in, k_in, v_in, n_heads, mask=None)
    ref_out2, ref_attn2 = ref_forward(params, q_in, k_in, v_in, n_heads, mask=None)

    jax.block_until_ready((out1, attn1, out2, attn2))

    assert out1.shape == (batch, seq, hidden_dim)
    assert attn1.shape == (batch, n_heads, seq, seq)
    assert out2.shape == (batch, seq, hidden_dim)
    assert attn2.shape == (batch, n_heads, seq, seq)
    assert jnp.allclose(out1, ref_out1, atol=1e-2, rtol=1e-2)
    assert jnp.allclose(attn1, ref_attn1, atol=1e-2, rtol=1e-2)
    assert jnp.allclose(out2, ref_out2, atol=1e-2, rtol=1e-2)
    assert jnp.allclose(attn2, ref_attn2, atol=1e-2, rtol=1e-2)

    print("KERNEL_OK")
</pallas_src>

<mosaic_0001>
module attributes {stable_mosaic.version = 11 : i64} {
  func.func @_linear_kernel(%arg0: i32, %arg1: i32, %arg2: i32, %arg3: memref<16x32xf32, #tpu.memory_space<vmem>>, %arg4: memref<32x96xf32, #tpu.memory_space<vmem>>, %arg5: memref<1x96xf32, #tpu.memory_space<vmem>>, %arg6: memref<16x96xf32, #tpu.memory_space<vmem>>, %arg7: memref<16x96xf32, #tpu.memory_space<vmem>>) attributes {dimension_semantics = [#tpu.dimension_semantics<parallel>, #tpu.dimension_semantics<parallel>, #tpu.dimension_semantics<arbitrary>], iteration_bounds = array<i64: 1, 1, 1>, scalar_prefetch = 0 : i64, scratch_operands = 1 : i64, tpu.core_type = #tpu.core_type<tc>, window_params = [{transform_indices = @transform_0, window_bounds = array<i64: 16, 32>}, {transform_indices = @transform_1, window_bounds = array<i64: 32, 96>}, {transform_indices = @transform_2, window_bounds = array<i64: 1, 96>}, {transform_indices = @transform_3, window_bounds = array<i64: 16, 96>}]} {
    %c0_i32 = arith.constant 0 : i32
    %0 = arith.cmpi eq, %arg2, %c0_i32 : i32
    %1 = arith.extui %0 : i1 to i32
    %c0_i32_0 = arith.constant 0 : i32
    %2 = arith.cmpi ne, %1, %c0_i32_0 : i32
    scf.if %2 {
      %cst_10 = arith.constant 0.000000e+00 : f32
      %12 = vector.broadcast %cst_10 : f32 to vector<16x96xf32>
      %c0_11 = arith.constant 0 : index
      %c0_12 = arith.constant 0 : index
      %13 = vector.load %arg7[%c0_11, %c0_12] : memref<16x96xf32, #tpu.memory_space<vmem>>, vector<16x96xf32>
      tpu.vector_store %arg7[%c0_11, %c0_12], %12 {strides = array<i32>} : memref<16x96xf32, #tpu.memory_space<vmem>>, vector<16x96xf32>,
    } else {
    }
    %c0 = arith.constant 0 : index
    %c0_1 = arith.constant 0 : index
    %3 = vector.load %arg7[%c0, %c0_1] : memref<16x96xf32, #tpu.memory_space<vmem>>, vector<16x96xf32>
    %c0_2 = arith.constant 0 : index
    %c0_3 = arith.constant 0 : index
    %4 = vector.load %arg3[%c0_2, %c0_3] : memref<16x32xf32, #tpu.memory_space<vmem>>, vector<16x32xf32>
    %c0_4 = arith.constant 0 : index
    %c0_5 = arith.constant 0 : index
    %5 = vector.load %arg4[%c0_4, %c0_5] : memref<32x96xf32, #tpu.memory_space<vmem>>, vector<32x96xf32>
    %cst = arith.constant dense<0.000000e+00> : vector<16x96xf32>
    %6 = tpu.matmul %4, %5, %cst {dimension_numbers = #tpu.dot_dimension_numbers<[1], [0], [0], [1], [0, 0, 1, 1], [], []>} : vector<16x32xf32>, vector<32x96xf32>, vector<16x96xf32> -> vector<16x96xf32>
    %7 = arith.addf %3, %6 : vector<16x96xf32>
    %c0_6 = arith.constant 0 : index
    %c0_7 = arith.constant 0 : index
    %8 = vector.load %arg7[%c0_6, %c0_7] : memref<16x96xf32, #tpu.memory_space<vmem>>, vector<16x96xf32>
    tpu.vector_store %arg7[%c0_6, %c0_7], %7 {strides = array<i32>} : memref<16x96xf32, #tpu.memory_space<vmem>>, vector<16x96xf32>,
    %c0_i32_8 = arith.constant 0 : i32
    %9 = arith.cmpi eq, %arg2, %c0_i32_8 : i32
    %10 = arith.extui %9 : i1 to i32
    %c0_i32_9 = arith.constant 0 : i32
    %11 = arith.cmpi ne, %10, %c0_i32_9 : i32
    scf.if %11 {
      %c0_10 = arith.constant 0 : index
      %c0_11 = arith.constant 0 : index
      %12 = vector.load %arg7[%c0_10, %c0_11] : memref<16x96xf32, #tpu.memory_space<vmem>>, vector<16x96xf32>
      %c0_12 = arith.constant 0 : index
      %c0_13 = arith.constant 0 : index
      %13 = vector.load %arg5[%c0_12, %c0_13] : memref<1x96xf32, #tpu.memory_space<vmem>>, vector<1x96xf32>
      %14 = vector.broadcast %13 : vector<1x96xf32> to vector<16x96xf32>
      %15 = arith.addf %12, %14 : vector<16x96xf32>
      %c0_14 = arith.constant 0 : index
      %c0_15 = arith.constant 0 : index
      %16 = vector.load %arg6[%c0_14, %c0_15] : memref<16x96xf32, #tpu.memory_space<vmem>>, vector<16x96xf32>
      tpu.vector_store %arg6[%c0_14, %c0_15], %15 {strides = array<i32>} : memref<16x96xf32, #tpu.memory_space<vmem>>, vector<16x96xf32>,
    } else {
    }
    return
  }
  func.func @transform_0(%arg0: i32, %arg1: i32, %arg2: i32) -> (i32, i32) {
    %c0_i32 = arith.constant 0 : i32
    return %arg0, %arg2 : i32, i32
  }
  func.func @transform_1(%arg0: i32, %arg1: i32, %arg2: i32) -> (i32, i32) {
    %c0_i32 = arith.constant 0 : i32
    return %arg2, %arg1 : i32, i32
  }
  func.func @transform_2(%arg0: i32, %arg1: i32, %arg2: i32) -> (i32, i32) {
    %c0_i32 = arith.constant 0 : i32
    %c0_i32_0 = arith.constant 0 : i32
    return %c0_i32, %arg1 : i32, i32
  }
  func.func @transform_3(%arg0: i32, %arg1: i32, %arg2: i32) -> (i32, i32) {
    %c0_i32 = arith.constant 0 : i32
    return %arg0, %arg1 : i32, i32
  }
}

</mosaic_0001>

<bundles_post_ra>
// kernel: tpu_custom_call.1
= control target key start
LH: loop header
LB: loop body
LE: loop exit
PB: predicated region body
PF: predicated region fallthrough
CT: control target
= control target key end

     0   :  { %8 = vsyncpa [#allocation4], 0  ;;  %s326_s0 = inlined_call_operand.hbm [shape: f32[16,32], index: 0, kind: input, shape index: {}]   ;;  %s327_s1 = inlined_call_operand.hbm [shape: f32[32,96], index: 1, kind: input, shape index: {}]   ;;  %s328_s2 = inlined_call_operand.vmem [shape: f32[1,96], index: 2, kind: input, shape index: {}]   ;;  %s329_s3 = inlined_call_operand.hbm [shape: f32[16,96], index: 3, kind: output, shape index: {}]  }
   0x1   :  { %9 = vsyncpa [#allocation7], 0 }
   0x2   :  { %10 = vsyncpa [#allocation5], 0  ;;  %s271_s12 = smov [#allocation3]  }
   0x3   :  { %s16_s13 = sshll.u32 %s271_s12, 4  ;;  %s17_s13 = int_to_ptr.vmem [resolvable:$true] %s16_s13 }
   0x4   :  { %s213_s14 = scalar_lea.vmem %s17_s13, 256  ;;  %p218_p1 = scmp.lt.s32.totalorder %s17_s13, %s17_s13 }
   0x5   :  { %p214_p0 = scmp.ne.s32.totalorder %s17_s13, %s213_s14  ;;  %p219_p2 = scmp.lt.s32.totalorder %s213_s14, %s213_s14 }
   0x7   :  { %p220_p3 = por %p219_p2, %p218_p1 }
   0x9   :  { %p221_p4 = pnand %p220_p3, %p214_p0 }
   0xb   :  { %224 = shalt.err (!%p221_p4)
}
   0xc   :  { %s272_s15 = smov 128   ;;  %s273_s16 = smov 8  }
   0xd   :  { %22 = dma.hbm_to_vmem [thread:$0]  %s326_s0, 256, %s17_s13, [#allocation4], %s272_s15, %s272_s15, %s273_s16  }
   0xe   :  { %s274_s19 = smov [#allocation6]  }
   0xf   :  { %s28_s20 = sshll.u32 %s274_s19, 4  ;;  %s29_s20 = int_to_ptr.vmem [resolvable:$true] %s28_s20 }
  0x10   :  { %s233_s21 = scalar_lea.vmem %s29_s20, 512  ;;  %p238_p6 = scmp.lt.s32.totalorder %s29_s20, %s29_s20 }
  0x11   :  { %p234_p5 = scmp.ne.s32.totalorder %s29_s20, %s233_s21  ;;  %p239_p7 = scmp.lt.s32.totalorder %s233_s21, %s233_s21 }
  0x13   :  { %p240_p8 = por %p239_p7, %p238_p6 }
  0x15   :  { %p241_p9 = pnand %p240_p8, %p234_p5 }
  0x17   :  { %244 = shalt.err (!%p241_p9)
}
  0x18   :  { %34 = dma.hbm_to_vmem [thread:$0]  %s327_s1, 512, %s29_s20, [#allocation7], %s272_s15, %s272_s15, %s273_s16  }
  0x19   :  { %265 = dma.done.wait [#allocation4], 256  }
  0x1a   :  { %266 = vsyncadd [#allocation4], 4294967040 }
  0x1b   :  { %267 = dma.done.wait [#allocation7], 512  }
  0x1c   :  { %268 = vsyncadd [#allocation7], 4294966784  ;;  %vm47_vm0 = vcmask 785408   ;;  %v275_v0 = vmov 0.0   ;;  %vm58_vm1 = vcmask 261120   ;;  %v57_v1 = vld [vmem:[#allocation6 + $0x18] sm:$0xff] }
  0x1d   :  { %49 = vst.msk [vmem:[#allocation2 + $0x8] sm:$0xff] %vm47_vm0, %v275_v0  ;;  %48 = vst.msk [vmem:[#allocation2] sm:$0xff] %vm47_vm0, %v275_v0  ;;  %v56_v2 = vld [vmem:[#allocation6 + $0x10] sm:$0xff]  ;;  %188 = vmatprep.subr.mxu0 %v57_v1  ;;  %v55_v4 = vld [vmem:[#allocation6 + $0x8] sm:$0xff]  ;;  %s276_s24 = smov [#allocation8]  }
  0x1e   :  { %v52_v3 = vld [vmem:[#allocation3] sm:$0xff]  ;;  %189 = vmatpush3.msra.mxu0 %v57_v1  ;;  %v54_v5 = vld [vmem:[#allocation6] sm:$0xff]  ;;  %v53_v6 = vld [vmem:[#allocation3 + $0x8] sm:$0xff]  ;;  %s166_s25 = sshll.u32 %s276_s24, 4  ;;  %s167_s25 = int_to_ptr.vmem [resolvable:$true] %s166_s25 }
  0x1f   :  { %196 = vmatprep.mubr.msk.f32.mxu0 %vm58_vm1, %v52_v3  ;;  %190 = vmatprep.subr.mxu0 %v56_v2  ;;  %v181_v13 = vld [vmem:[%s328_s2] ss:$0 sm:$0xff]  ;;  %s245_s26 = scalar_lea.vmem %s167_s25, 256  ;;  %p250_p11 = scmp.lt.s32.totalorder %s167_s25, %s167_s25 }
  0x20   :  { %191 = vmatpush3.msra.mxu0 %v56_v2  ;;  %p246_p10 = scmp.ne.s32.totalorder %s167_s25, %s245_s26  ;;  %p251_p12 = scmp.lt.s32.totalorder %s245_s26, %s245_s26 }
  0x21   :  { %192 = vmatprep.subr.mxu0 %v55_v4 }
  0x22   :  { %193 = vmatpush3.msra.mxu0 %v55_v4  ;;  %p252_p13 = por %p251_p12, %p250_p11 }
  0x23   :  { %194 = vmatprep.subr.mxu0 %v54_v5 }
  0x24   :  { %195 = vmatpush3.msra.mxu0 %v54_v5  ;;  %v51_v7 = vld [vmem:[#allocation2 + $0x8] sm:$0xff]  ;;  %v50_v9 = vld [vmem:[#allocation2] sm:$0xff]  ;;  %p253_p0 = pnand %p252_p13, %p246_p10 }
  0x25   :  { %197 = vmatmul.mubr.msk.f32.vlgmr.msra.gmra.mxu0 %vm58_vm1, %v53_v6 }
  0xe5   :  { %v198_v8 = vpop.f32.mrf.mxu0 }
  0xe6   :  { %v141_v10 = vadd.f32 %v198_v8, %v51_v7 }
  0xe7   :  { %v131_v11 = vpop.f32.mrf.mxu0 }
  0xe8   :  { %144 = vst.msk [vmem:[#allocation2 + $0x8] sm:$0xff] %vm47_vm0, %v141_v10  ;;  %v140_v12 = vadd.f32 %v131_v11, %v50_v9 }
  0xea   :  { %143 = vst.msk [vmem:[#allocation2] sm:$0xff] %vm47_vm0, %v140_v12 }
  0xef   :  { %v149_v14 = vld [vmem:[#allocation2 + $0x8] sm:$0xff] }
  0xf0   :  { %v158_v15 = vadd.f32 %v181_v13, %v149_v14 }
  0xf1   :  { %v148_v16 = vld [vmem:[#allocation2] sm:$0xff] }
  0xf2   :  { %v157_v17 = vadd.f32 %v181_v13, %v148_v16  ;;  %160 = vst.msk [vmem:[#allocation8 + $0x8] sm:$0xff] %vm47_vm0, %v158_v15 }
  0xf4   :  { %159 = vst.msk [vmem:[#allocation8] sm:$0xff] %vm47_vm0, %v157_v17 }
  0xf5   :  { %256 = shalt.err (!%p253_p0)
}
  0xf6   :  { %172 = dma.vmem_to_hbm [thread:$0]  %s167_s25, 256, %s329_s3, [#allocation5], %s272_s15, %s272_s15, %s273_s16  }
  0xf7   :  { %269 = dma.done.wait [#allocation5], 256  }
  0xf8   :  { %270 = vsyncadd [#allocation5], 4294967040 }
  0xf9   :  { %176 = vsyncpa [#allocation4], 1 }
  0xfa   :  { %177 = vsyncpa [#allocation7], 1 }
  0xfb   :  { %178 = vsyncpa [#allocation5], 1 }

</bundles_post_ra>
